<compile_context>
chip_gen: v7x
topology: tpu7x:2x2x1
jax: 0.10.0
libtpu: 0.0.40
codegen_flags: <defaults>
</compile_context>

<pallas_src>
import jax
import jax.numpy as jnp
from jax.experimental import pallas as pl
from jax.experimental.pallas import tpu as pltpu

MEAN = 0.0
STD = 0.4
CLAMP_MIN = -1.0
CLAMP_MAX = 1.0

LANE = 128
SUBLANE = 8
# ~2 MiB of f32 per block -> 4x (double-buffered in + out) ~= 8 MiB VMEM.
TARGET_BLOCK_ELEMS = 512 * 1024


def _trunc_gauss_kernel(x_ref, o_ref):
    x = x_ref[...].astype(jnp.float32)
    inv_two_var = 1.0 / (2.0 * STD * STD)
    # mean == 0; exp(-x^2 * c) is in (0, 1] so clamp(-1, 1) is redundant.
    gauss = jnp.exp(-(x * x) * inv_two_var)
    o_ref[...] = gauss.astype(o_ref.dtype)


def _choose_width(n):
    """Widest lane dim (multiple of 128, <= 2048) that divides n."""
    for w in (2048, 1024, 512, 256, 128):
        if n % w == 0:
            return w
    return LANE


def truncated_gauss_activation(x, target_block_elems=TARGET_BLOCK_ELEMS):
    """Elementwise truncated-Gauss activation. x: any shape (e.g. NCHW)."""
    orig_shape = x.shape
    orig_dtype = x.dtype
    n = x.size
    flat = x.reshape(-1)

    if n % LANE == 0:
        w = _choose_width(n)
        padded = False
    else:
        # Ragged tail: pad the lane dim only (rare for conv activations).
        w = LANE
        flat = jnp.pad(flat, (0, (-n) % LANE))
        padded = True

    rows = flat.size // w
    slab = flat.reshape(rows, w)

    # Block rows: ~target_block_elems per block, multiple of 8, capped at
    # the full row count (full-dim blocks are always legal).
    block_rows = max(SUBLANE, (target_block_elems // w) // SUBLANE * SUBLANE)
    if block_rows >= rows:
        block_rows = rows
    grid = (pl.cdiv(rows, block_rows),)

    out_slab = pl.pallas_call(
        _trunc_gauss_kernel,
        out_shape=jax.ShapeDtypeStruct((rows, w), orig_dtype),
        grid=grid,
        in_specs=[pl.BlockSpec((block_rows, w), lambda i: (i, 0))],
        out_specs=pl.BlockSpec((block_rows, w), lambda i: (i, 0)),
        compiler_params=pltpu.CompilerParams(
            dimension_semantics=("parallel",)),
    )(slab)

    out = out_slab.reshape(-1)
    if padded:
        out = out[:n]
    return out.reshape(orig_shape)


def _reference(x):
    gauss = jnp.exp(-((x - MEAN) ** 2) / (2 * STD ** 2))
    return jnp.clip(gauss, CLAMP_MIN, CLAMP_MAX)


if __name__ == "__main__":
    key = jax.random.PRNGKey(0)

    # Primary test: NCHW input matching the PyTorch (conv-style) convention.
    x = jax.random.normal(key, (2, 4, 16, 16), dtype=jnp.float32)
    out = jax.block_until_ready(truncated_gauss_activation(x))
    ref = _reference(x)
    assert out.shape == x.shape and out.dtype == x.dtype
    assert jnp.allclose(out, ref, atol=1e-6, rtol=1e-6)

    # Secondary test: ragged size (not a multiple of 128) with a small block
    # target to exercise the padded-lane path and masked partial last block.
    x2 = jax.random.normal(jax.random.PRNGKey(1), (2, 4, 30, 30),
                           dtype=jnp.float32)
    out2 = jax.block_until_ready(
        truncated_gauss_activation(x2, target_block_elems=2048))
    ref2 = _reference(x2)
    assert out2.shape == x2.shape and out2.dtype == x2.dtype
    assert jnp.allclose(out2, ref2, atol=1e-6, rtol=1e-6)

    print("KERNEL_OK")
</pallas_src>

<mosaic_0001>
module attributes {stable_mosaic.version = 11 : i64} {
  func.func @_trunc_gauss_kernel(%arg0: i32, %arg1: memref<1x2048xf32, #tpu.memory_space<vmem>>, %arg2: memref<1x2048xf32, #tpu.memory_space<vmem>>) attributes {dimension_semantics = [#tpu.dimension_semantics<parallel>], iteration_bounds = array<i64: 1>, scalar_prefetch = 0 : i64, scratch_operands = 0 : i64, tpu.core_type = #tpu.core_type<tc>, window_params = [{transform_indices = @transform_0, window_bounds = array<i64: 1, 2048>}, {transform_indices = @transform_1, window_bounds = array<i64: 1, 2048>}]} {
    %c0 = arith.constant 0 : index
    %c0_0 = arith.constant 0 : index
    %0 = vector.load %arg1[%c0, %c0_0] : memref<1x2048xf32, #tpu.memory_space<vmem>>, vector<1x2048xf32>
    %1 = arith.mulf %0, %0 : vector<1x2048xf32>
    %cst = arith.constant 0.000000e+00 : f32
    %2 = vector.broadcast %cst : f32 to vector<1x2048xf32>
    %3 = arith.subf %2, %1 : vector<1x2048xf32>
    %cst_1 = arith.constant 3.125000e+00 : f32
    %4 = vector.broadcast %cst_1 : f32 to vector<1x2048xf32>
    %5 = arith.mulf %3, %4 : vector<1x2048xf32>
    %6 = math.exp %5 : vector<1x2048xf32>
    %c0_2 = arith.constant 0 : index
    %c0_3 = arith.constant 0 : index
    %7 = vector.load %arg2[%c0_2, %c0_3] : memref<1x2048xf32, #tpu.memory_space<vmem>>, vector<1x2048xf32>
    tpu.vector_store %arg2[%c0_2, %c0_3], %6 {strides = array<i32>} : memref<1x2048xf32, #tpu.memory_space<vmem>>, vector<1x2048xf32>,
    return
  }
  func.func @transform_0(%arg0: i32) -> (i32, i32) {
    %c0_i32 = arith.constant 0 : i32
    %c0_i32_0 = arith.constant 0 : i32
    return %arg0, %c0_i32 : i32, i32
  }
  func.func @transform_1(%arg0: i32) -> (i32, i32) {
    %c0_i32 = arith.constant 0 : i32
    %c0_i32_0 = arith.constant 0 : i32
    return %arg0, %c0_i32 : i32, i32
  }
}

</mosaic_0001>

<bundles_post_ra>
// kernel: tpu_custom_call.1
= control target key start
LH: loop header
LB: loop body
LE: loop exit
PB: predicated region body
PF: predicated region fallthrough
CT: control target
= control target key end

     0   :  { %6 = vsyncpa [#allocation3], 0  ;;  %s140_s0 = inlined_call_operand.hbm [shape: f32[1,2048], index: 0, kind: input, shape index: {}]   ;;  %s141_s1 = inlined_call_operand.hbm [shape: f32[1,2048], index: 1, kind: output, shape index: {}]  }
   0x1   :  { %7 = vsyncpa [#allocation4], 0  ;;  %s104_s6 = smov [#allocation2]   ;;  %s56_s10 = scalar_lea.hbm %s140_s0, 256 }
   0x2   :  { %s14_s7 = sshll.u32 %s104_s6, 4  ;;  %p57_p0 = scmp.ne.s32.totalorder %s140_s0, %s56_s10  ;;  %s15_s7 = int_to_ptr.vmem [resolvable:$true] %s14_s7 }
   0x3   :  { %p60_p1 = scmp.lt.u32.totalorder %s56_s10, %s140_s0 }
   0x5   :  { %p62_p2 = pnand %p60_p1, %p57_p0 }
   0x7   :  { %65 = shalt.err (!%p62_p2)
}
   0x8   :  { %s66_s15 = scalar_lea.vmem %s15_s7, 256  ;;  %p71_p4 = scmp.lt.s32.totalorder %s15_s7, %s15_s7 }
   0x9   :  { %p67_p3 = scmp.ne.s32.totalorder %s15_s7, %s66_s15  ;;  %p72_p5 = scmp.lt.s32.totalorder %s66_s15, %s66_s15 }
   0xb   :  { %p73_p6 = por %p72_p5, %p71_p4 }
   0xd   :  { %p74_p7 = pnand %p73_p6, %p67_p3 }
   0xf   :  { %77 = shalt.err (!%p74_p7)
}
  0x10   :  { %17 = dma.hbm_to_vmem [thread:$0]  %s140_s0, 256, %s15_s7, [#allocation3]  }
  0x11   :  { %100 = dma.done.wait [#allocation3], 256  }
  0x12   :  { %101 = vsyncadd [#allocation3], 4294967040  ;;  %v21_v0 = vld [vmem:[#allocation2] sm:$0xff]  ;;  %v22_v1 = vld [vmem:[#allocation2 + $0x8] sm:$0xff]  ;;  %s105_s18 = smov [#allocation5]  }
  0x13   :  { %v23_v2 = vmul.f32 %v21_v0, %v21_v0  ;;  %v24_v3 = vmul.f32 %v22_v1, %v22_v1  ;;  %s41_s19 = sshll.u32 %s105_s18, 4  ;;  %s42_s19 = int_to_ptr.vmem [resolvable:$true] %s41_s19 }
  0x14   :  { %s78_s0 = scalar_lea.vmem %s42_s19, 256  ;;  %p83_p9 = scmp.lt.s32.totalorder %s42_s19, %s42_s19 }
  0x15   :  { %v25_v4 = vsub.f32 0.0, %v23_v2  ;;  %v26_v5 = vsub.f32 0.0, %v24_v3  ;;  %p79_p8 = scmp.ne.s32.totalorder %s42_s19, %s78_s0  ;;  %p84_p10 = scmp.lt.s32.totalorder %s78_s0, %s78_s0 }
  0x17   :  { %v27_v6 = vmul.f32 3.125, %v25_v4  ;;  %v28_v7 = vmul.f32 3.125, %v26_v5  ;;  %p85_p11 = por %p84_p10, %p83_p9 }
  0x19   :  { %v29_v8 = vmul.f32 1.442695, %v27_v6  ;;  %v31_v9 = vmul.f32 1.442695, %v28_v7  ;;  %p86_p12 = pnand %p85_p11, %p79_p8 }
  0x1b   :  { %52 = vpow2.f32 %v29_v8 }
  0x1c   :  { %54 = vpow2.f32 %v31_v9 }
  0x25   :  { %v53_v10 = vpop.eup %52 }
  0x26   :  { %v55_v11 = vpop.eup %54  ;;  %33 = vst [vmem:[#allocation5] sm:$0xff] %v53_v10 }
  0x27   :  { %34 = vst [vmem:[#allocation5 + $0x8] sm:$0xff] %v55_v11 }
  0x28   :  { %89 = shalt.err (!%p86_p12)
}
  0x29   :  { %s90_s22 = scalar_lea.hbm %s141_s1, 256 }
  0x2a   :  { %p91_p13 = scmp.ne.s32.totalorder %s141_s1, %s90_s22  ;;  %p94_p0 = scmp.lt.u32.totalorder %s90_s22, %s141_s1 }
  0x2c   :  { %p96_p1 = pnand %p94_p0, %p91_p13 }
  0x2e   :  { %99 = shalt.err (!%p96_p1)
}
  0x2f   :  { %44 = dma.vmem_to_hbm [thread:$0]  %s42_s19, 256, %s141_s1, [#allocation4]  }
  0x30   :  { %102 = dma.done.wait [#allocation4], 256  }
  0x31   :  { %103 = vsyncadd [#allocation4], 4294967040 }
  0x32   :  { %48 = vsyncpa [#allocation3], 1 }
  0x33   :  { %49 = vsyncpa [#allocation4], 1 }

</bundles_post_ra>
